<compile_context>
chip_gen: v7x
topology: tpu7x:2x2x1
jax: 0.10.0
libtpu: 0.0.40
codegen_flags: <defaults>
</compile_context>

<pallas_src>
import functools

import jax
import jax.numpy as jnp
from jax import lax
from jax.experimental import pallas as pl
from jax.experimental.pallas import tpu as pltpu

_TARGET_TILE_BYTES = 8 << 20      # ~8 MiB of input per grid step
_SUB_CHUNK_ELEMS = 64 * 1024      # elements per inner-loop chunk (~256 KiB f32 temps)
_VMEM_LIMIT_BYTES = 40 << 20      # safe on v5e/v6e (128 MiB) and v7x (64 MiB)


def _smooth_flat_kernel(x_ref, acc_ref, *, W, sb, n_sub, acc_rows):
    # x_ref  : (n_sub, sb, HW) VMEM tile in the input dtype
    # acc_ref: (1, acc_rows, HW) f32 output block; persistent accumulator over
    #          the (arbitrary) reduction grid axis 1.
    HW = x_ref.shape[-1]

    @pl.when(pl.program_id(1) == 0)
    def _():
        acc_ref[...] = jnp.zeros_like(acc_ref)

    def body(j, carry):
        x = x_ref[j]                                    # (sb, HW), native dtype
        # Full-extent cyclic lane rolls (XLU).  For interior pixels these are
        # exactly the (h, w-1), (h, w+1), (h-1, w), (h+1, w) neighbours; the
        # wrapped boundary pixels are masked out once in the wrapper epilogue.
        left = pltpu.roll(x, shift=1, axis=1)
        right = pltpu.roll(x, shift=HW - 1, axis=1)
        up = pltpu.roll(x, shift=W, axis=1)
        down = pltpu.roll(x, shift=HW - W, axis=1)
        two_x = x + x
        der2 = jnp.abs(two_x - left - right) + jnp.abs(two_x - up - down)
        der2 = der2.astype(jnp.float32)                 # upcast only for accumulation
        if sb == acc_rows:
            psum = der2
        else:
            psum = jnp.sum(der2.reshape(sb // acc_rows, acc_rows, HW), axis=0)
        acc_ref[...] += psum[None]
        return carry

    if n_sub == 1:
        body(0, 0)
    else:
        lax.fori_loop(0, n_sub, body, 0)


def _smooth_slice_kernel(x_ref, acc_ref, *, sb, n_sub):
    # Fallback for H*W not a multiple of 128 (interior-slice stencil).
    # x_ref  : (n_sub, sb, H, W) VMEM tile
    # acc_ref: (1, H-2, W-2) f32 output block / accumulator
    @pl.when(pl.program_id(1) == 0)
    def _():
        acc_ref[...] = jnp.zeros_like(acc_ref)

    def body(j, carry):
        x = x_ref[j]                                    # (sb, H, W)
        c = x[:, 1:-1, 1:-1]
        h = c + c - x[:, 1:-1, :-2] - x[:, 1:-1, 2:]
        v = c + c - x[:, :-2, 1:-1] - x[:, 2:, 1:-1]
        der2 = (jnp.abs(h) + jnp.abs(v)).astype(jnp.float32)
        acc_ref[...] += jnp.sum(der2, axis=0)[None]
        return carry

    if n_sub == 1:
        body(0, 0)
    else:
        lax.fori_loop(0, n_sub, body, 0)


def smoothness_loss(depth):
    assert depth.ndim == 4, (
        "expected 4-dimensional data, but instead got {}".format(depth.ndim))
    N, C, H, W = depth.shape
    assert H >= 3 and W >= 3, "need at least 3x3 spatial extent"

    B = N * C
    HW = H * W
    itemsize = jnp.dtype(depth.dtype).itemsize
    per_image = HW * itemsize

    # TODO(synk): single images larger than a few MiB need spatial (halo)
    # tiling; this kernel only tiles over the batch axis.

    # --- sub-batch (inner-loop) chunk: bounds per-iteration temporaries -----
    sb = max(1, min(B, _SUB_CHUNK_ELEMS // HW))
    if B >= 8:
        sb = max(8, (sb // 8) * 8)          # sublane-aligned chunks

    # --- batch block per grid step (~_TARGET_TILE_BYTES of input) -----------
    bb = max(sb, (_TARGET_TILE_BYTES // per_image) // sb * sb)
    bb = min(bb, pl.cdiv(B, sb) * sb)
    if B % bb != 0:
        # Prefer a block size that divides B so no HBM pad copy is needed.
        cand = bb - sb
        while cand >= sb and cand * 4 >= bb:
            if B % cand == 0:
                bb = cand
                break
            cand -= sb
    n_sub = bb // sb
    num_blocks = pl.cdiv(B, bb)
    B_pad = num_blocks * bb

    # --- split batch blocks across TensorCores (v7x has two) ----------------
    num_par = 2 if (num_blocks >= 2 and num_blocks % 2 == 0) else 1
    bpp = num_blocks // num_par             # blocks per parallel slice

    use_flat = (HW % 128 == 0)              # lane-dense roll-stencil fast path
    acc_rows = 8 if (use_flat and sb % 8 == 0) else 1

    x = depth.reshape(B, HW) if use_flat else depth.reshape(B, H, W)
    if B_pad != B:
        # Rare fallback: zero-padded images contribute exactly 0 to the sum.
        pad = [(0, B_pad - B)] + [(0, 0)] * (x.ndim - 1)
        x = jnp.pad(x, pad)
    x = x.reshape((B_pad // sb, sb) + x.shape[1:])      # (num_blocks*n_sub, sb, ...)

    cost = pl.CostEstimate(
        flops=int(B_pad * HW * 8),
        transcendentals=0,
        bytes_accessed=int(B_pad * per_image + num_par * HW * 4),
    )
    cparams = pltpu.CompilerParams(
        dimension_semantics=("parallel", "arbitrary"),
        vmem_limit_bytes=_VMEM_LIMIT_BYTES,
    )

    if use_flat:
        kernel = functools.partial(_smooth_flat_kernel, W=W, sb=sb,
                                   n_sub=n_sub, acc_rows=acc_rows)
        out_shape = jax.ShapeDtypeStruct((num_par, acc_rows, HW), jnp.float32)
        in_spec = pl.BlockSpec((n_sub, sb, HW), lambda p, i: (p * bpp + i, 0, 0))
        out_spec = pl.BlockSpec((1, acc_rows, HW), lambda p, i: (p, 0, 0))
    else:
        kernel = functools.partial(_smooth_slice_kernel, sb=sb, n_sub=n_sub)
        out_shape = jax.ShapeDtypeStruct((num_par, H - 2, W - 2), jnp.float32)
        in_spec = pl.BlockSpec((n_sub, sb, H, W),
                               lambda p, i: (p * bpp + i, 0, 0, 0))
        out_spec = pl.BlockSpec((1, H - 2, W - 2), lambda p, i: (p, 0, 0))

    acc = pl.pallas_call(
        kernel,
        out_shape=out_shape,
        grid_spec=pltpu.PrefetchScalarGridSpec(
            num_scalar_prefetch=0,
            grid=(num_par, bpp),
            in_specs=[in_spec],
            out_specs=out_spec,
        ),
        compiler_params=cparams,
        cost_estimate=cost,
    )(x)

    if use_flat:
        pos = jnp.arange(HW)
        hh, ww = pos // W, pos % W
        interior = ((hh >= 1) & (hh <= H - 2) & (ww >= 1) & (ww <= W - 2))
        total = jnp.sum(jnp.sum(acc, axis=(0, 1)) * interior.astype(jnp.float32))
    else:
        total = jnp.sum(acc)

    # Mean over the true (un-padded) interior-element count.
    return total / jnp.float32(B * (H - 2) * (W - 2))


def _smoothness_ref(x):
    c = x[:, :, 1:-1, 1:-1]
    horizontal = 2 * c - x[:, :, 1:-1, :-2] - x[:, :, 1:-1, 2:]
    vertical = 2 * c - x[:, :, :-2, 1:-1] - x[:, :, 2:, 1:-1]
    return jnp.mean(jnp.abs(horizontal) + jnp.abs(vertical))


if __name__ == "__main__":
    key = jax.random.PRNGKey(0)
    # NCHW depth input, as the PyTorch module would receive.
    depth = jax.random.normal(key, (2, 4, 16, 16), dtype=jnp.float32)

    loss_fn = jax.jit(smoothness_loss)
    loss = loss_fn(depth)
    jax.block_until_ready(loss)

    ref = _smoothness_ref(depth)
    assert jnp.allclose(loss, ref, atol=1e-5, rtol=1e-5), (loss, ref)

    print("KERNEL_OK")
</pallas_src>

<mosaic_0001>
module attributes {stable_mosaic.version = 11 : i64} {
  func.func @_smooth_flat_kernel(%arg0: i32, %arg1: i32, %arg2: memref<1x8x256xf32, #tpu.memory_space<vmem>>, %arg3: memref<1x8x256xf32, #tpu.memory_space<vmem>>) attributes {dimension_semantics = [#tpu.dimension_semantics<parallel>, #tpu.dimension_semantics<arbitrary>], iteration_bounds = array<i64: 1, 1>, scalar_prefetch = 0 : i64, scratch_operands = 0 : i64, tpu.core_type = #tpu.core_type<tc>, window_params = [{transform_indices = @transform_0, window_bounds = array<i64: 1, 8, 256>}, {transform_indices = @transform_1, window_bounds = array<i64: 1, 8, 256>}]} {
    %c0_i32 = arith.constant 0 : i32
    %0 = arith.cmpi eq, %arg1, %c0_i32 : i32
    %1 = arith.extui %0 : i1 to i32
    %c0_i32_0 = arith.constant 0 : i32
    %2 = arith.cmpi ne, %1, %c0_i32_0 : i32
    scf.if %2 {
      %cst = arith.constant 0.000000e+00 : f32
      %21 = vector.broadcast %cst : f32 to vector<1x8x256xf32>
      %c0_9 = arith.constant 0 : index
      %c0_10 = arith.constant 0 : index
      %c0_11 = arith.constant 0 : index
      %22 = vector.load %arg3[%c0_9, %c0_10, %c0_11] : memref<1x8x256xf32, #tpu.memory_space<vmem>>, vector<1x8x256xf32>
      tpu.vector_store %arg3[%c0_9, %c0_10, %c0_11], %21 {strides = array<i32>} : memref<1x8x256xf32, #tpu.memory_space<vmem>>, vector<1x8x256xf32>,
    } else {
    }
    %c0 = arith.constant 0 : index
    %c0_1 = arith.constant 0 : index
    %c0_2 = arith.constant 0 : index
    %3 = vector.load %arg2[%c0, %c0_1, %c0_2] : memref<1x8x256xf32, #tpu.memory_space<vmem>>, vector<1x8x256xf32>
    %4 = vector.shape_cast %3 : vector<1x8x256xf32> to vector<8x256xf32>
    %c1_i32 = arith.constant 1 : i32
    %5 = tpu.dynamic_rotate %4 by %c1_i32 dim 1 : vector<8x256xf32>, i32 -> vector<8x256xf32>
    %c255_i32 = arith.constant 255 : i32
    %6 = tpu.dynamic_rotate %4 by %c255_i32 dim 1 : vector<8x256xf32>, i32 -> vector<8x256xf32>
    %c16_i32 = arith.constant 16 : i32
    %7 = tpu.dynamic_rotate %4 by %c16_i32 dim 1 : vector<8x256xf32>, i32 -> vector<8x256xf32>
    %c240_i32 = arith.constant 240 : i32
    %8 = tpu.dynamic_rotate %4 by %c240_i32 dim 1 : vector<8x256xf32>, i32 -> vector<8x256xf32>
    %9 = arith.addf %4, %4 : vector<8x256xf32>
    %10 = arith.subf %9, %5 : vector<8x256xf32>
    %11 = arith.subf %10, %6 : vector<8x256xf32>
    %12 = math.absf %11 : vector<8x256xf32>
    %13 = arith.subf %9, %7 : vector<8x256xf32>
    %14 = arith.subf %13, %8 : vector<8x256xf32>
    %15 = math.absf %14 : vector<8x256xf32>
    %16 = arith.addf %12, %15 : vector<8x256xf32>
    %c0_3 = arith.constant 0 : index
    %c0_4 = arith.constant 0 : index
    %c0_5 = arith.constant 0 : index
    %17 = vector.load %arg3[%c0_3, %c0_4, %c0_5] : memref<1x8x256xf32, #tpu.memory_space<vmem>>, vector<1x8x256xf32>
    %18 = vector.shape_cast %16 : vector<8x256xf32> to vector<1x8x256xf32>
    %19 = arith.addf %17, %18 : vector<1x8x256xf32>
    %c0_6 = arith.constant 0 : index
    %c0_7 = arith.constant 0 : index
    %c0_8 = arith.constant 0 : index
    %20 = vector.load %arg3[%c0_6, %c0_7, %c0_8] : memref<1x8x256xf32, #tpu.memory_space<vmem>>, vector<1x8x256xf32>
    tpu.vector_store %arg3[%c0_6, %c0_7, %c0_8], %19 {strides = array<i32>} : memref<1x8x256xf32, #tpu.memory_space<vmem>>, vector<1x8x256xf32>,
    return
  }
  func.func @transform_0(%arg0: i32, %arg1: i32) -> (i32, i32, i32) {
    %c1_i32 = arith.constant 1 : i32
    %0 = arith.muli %arg0, %c1_i32 : i32
    %1 = arith.addi %0, %arg1 : i32
    %c0_i32 = arith.constant 0 : i32
    %c0_i32_0 = arith.constant 0 : i32
    %c0_i32_1 = arith.constant 0 : i32
    return %1, %c0_i32, %c0_i32_0 : i32, i32, i32
  }
  func.func @transform_1(%arg0: i32, %arg1: i32) -> (i32, i32, i32) {
    %c0_i32 = arith.constant 0 : i32
    %c0_i32_0 = arith.constant 0 : i32
    %c0_i32_1 = arith.constant 0 : i32
    return %arg0, %c0_i32, %c0_i32_0 : i32, i32, i32
  }
}

</mosaic_0001>

<bundles_post_ra>
// kernel: smoothness_loss.1
= control target key start
LH: loop header
LB: loop body
LE: loop exit
PB: predicated region body
PF: predicated region fallthrough
CT: control target
= control target key end

     0   :  { %s103_s8 = smov 16   ;;  %s104_s9 = smov 1   ;;  %v40_v2 = vlaneseq  ;;  %s129_s0 = inlined_call_operand.vmem [shape: f32[1,8,256], index: 0, kind: input, shape index: {}]   ;;  %s130_s1 = inlined_call_operand.vmem [shape: f32[1,8,256], index: 1, kind: output, shape index: {}]  }
   0x1   :  { %v34_v0 = vld [vmem:[%s129_s0] sm:$0xff]  ;;  %v35_v1 = vld [vmem:[%s129_s0 + $0x8] sm:$0xff]  ;;  %s105_s12 = smov 127   ;;  %s106_s13 = smov 112  }
   0x2   :  { %52 = vrot.lane.b32.xlu1 %v34_v0, %s103_s8  ;;  %36 = vrot.lane.b32.xlu0 %v34_v0, %s104_s9  ;;  %v41_v3 = vand.u32 127, %v40_v2  ;;  %v66_v8 = vadd.f32 %v34_v0, %v34_v0  ;;  %v67_v9 = vadd.f32 %v35_v1, %v35_v1 }
   0x4   :  { %vm42_vm0 = vcmp.lt.s32.totalorder %v41_v3, 1  ;;  %vm56_vm1 = vcmp.lt.s32.totalorder %v41_v3, 16  ;;  %vm49_vm2 = vcmp.lt.s32.totalorder %v41_v3, 127  ;;  %vm63_vm3 = vcmp.lt.s32.totalorder %v41_v3, 112 }
   0x6   :  { %54 = vrot.lane.b32.xlu1 %v35_v1, %s103_s8  ;;  %38 = vrot.lane.b32.xlu0 %v35_v1, %s104_s9 }
   0xa   :  { %47 = vrot.lane.b32.xlu1 %v35_v1, %s105_s12  ;;  %45 = vrot.lane.b32.xlu0 %v34_v0, %s105_s12 }
   0xe   :  { %61 = vrot.lane.b32.xlu1 %v35_v1, %s106_s13  ;;  %59 = vrot.lane.b32.xlu0 %v34_v0, %s106_s13 }
  0x74   :  { %v53_v4 = vpop.permute.xlu1 %52  ;;  %v37_v5 = vpop.permute.xlu0 %36 }
  0x78   :  { %v55_v6 = vpop.permute.xlu1 %54  ;;  %v39_v7 = vpop.permute.xlu0 %38 }
  0x79   :  { %v44_v10 = vsel %vm42_vm0, %v39_v7, %v37_v5  ;;  %v43_v11 = vsel %vm42_vm0, %v37_v5, %v39_v7  ;;  %v57_v12 = vsel %vm56_vm1, %v53_v4, %v55_v6  ;;  %v58_v15 = vsel %vm56_vm1, %v55_v6, %v53_v4 }
  0x7a   :  { %v68_v16 = vsub.f32 %v66_v8, %v44_v10  ;;  %v69_v19 = vsub.f32 %v67_v9, %v43_v11  ;;  %v74_v21 = vsub.f32 %v66_v8, %v58_v15  ;;  %v75_v22 = vsub.f32 %v67_v9, %v57_v12 }
  0x7c   :  { %v48_v13 = vpop.permute.xlu1 %47  ;;  %v46_v14 = vpop.permute.xlu0 %45 }
  0x7d   :  { %v50_v17 = vsel %vm49_vm2, %v46_v14, %v48_v13  ;;  %v51_v18 = vsel %vm49_vm2, %v48_v13, %v46_v14 }
  0x7e   :  { %v70_v20 = vsub.f32 %v68_v16, %v50_v17  ;;  %v71_v23 = vsub.f32 %v69_v19, %v51_v18 }
  0x80   :  { %v62_v24 = vpop.permute.xlu1 %61  ;;  %v60_v25 = vpop.permute.xlu0 %59  ;;  %v72_v30 = vand.u32 2147483647, %v70_v20  ;;  %v73_v31 = vand.u32 2147483647, %v71_v23 }
  0x81   :  { %v64_v26 = vsel %vm63_vm3, %v60_v25, %v62_v24  ;;  %v65_v27 = vsel %vm63_vm3, %v62_v24, %v60_v25 }
  0x82   :  { %v76_v28 = vsub.f32 %v74_v21, %v64_v26  ;;  %v77_v29 = vsub.f32 %v75_v22, %v65_v27 }
  0x84   :  { %v78_v32 = vand.u32 2147483647, %v76_v28  ;;  %v79_v33 = vand.u32 2147483647, %v77_v29 }
  0x86   :  { %v80_v34 = vadd.f32 %v78_v32, %v72_v30  ;;  %v81_v35 = vadd.f32 %v79_v33, %v73_v31 }
  0x88   :  { %86 = vst [vmem:[%s130_s1] sm:$0xff] %v80_v34  ;;  %87 = vst [vmem:[%s130_s1 + $0x8] sm:$0xff] %v81_v35 }

</bundles_post_ra>
